<compile_context>
chip_gen: v6e
topology: v6e:2x2x1
jax: 0.10.0
libtpu: 0.0.40
codegen_flags: <defaults>
</compile_context>

<pallas_src>
import numpy as np
import jax
import jax.numpy as jnp
from jax.experimental import pallas as pl
from jax.experimental.pallas import tpu as pltpu

RADIUS = 2  # default radius in the PyTorch module


def make_cone_kernel(radius: int = RADIUS) -> np.ndarray:
    """Deterministic replica of ConeFilter.make_kernel."""
    domain = np.arange(-radius, radius + 1, dtype=np.float32)
    xx, yy = np.meshgrid(domain, domain, indexing="ij")  # torch.meshgrid default
    distance = xx ** 2 + yy ** 2
    return np.maximum(0.0, radius - np.sqrt(distance)).astype(np.float32)


def _normalized_kernel(radius: int) -> np.ndarray:
    kern = make_cone_kernel(radius)
    return (kern / kern.sum()).astype(np.float32)  # normalized=True in filter2D


def _round_up(a: int, b: int) -> int:
    return -(-a // b) * b


def cone_filter(x: jax.Array, radius: int = RADIUS, *,
                max_tile_rows=None, vmem_tile_budget=1 << 20) -> jax.Array:
    """Forward pass of ConeFilter on a (H, W) image (reflect border, normalized)."""
    assert x.ndim == 2
    H, W = x.shape
    assert H >= 2 and W >= 2
    out_dtype = x.dtype

    kern = _normalized_kernel(radius)
    R = radius
    nz = np.argwhere(kern != 0.0)
    if nz.size == 0:
        return x
    r_eff = int(np.max(np.abs(nz - R)))  # effective (pruned) radius; 1 for radius=2
    if r_eff == 0:
        return x  # normalized kernel collapses to identity
    assert r_eff <= 8, "fused halo path supports effective radius <= 8"
    # The cone kernel is symmetric in columns; the fused kernel relies on it.
    assert np.allclose(kern, kern[:, ::-1])
    P = r_eff

    # ---- rows: pad H up to a multiple of 8 with reflect-consistent rows ------
    # (only copies when H % 8 != 0; the first r_eff extension rows carry the
    #  correct reflect values, the rest feed discarded outputs)
    Hp = _round_up(H, 8)
    if Hp != H:
        idx = np.arange(Hp)
        refl = np.where(idx < H, idx, 2 * (H - 1) - idx)
        refl = np.clip(refl, 0, H - 1)
        x_in = x[np.asarray(refl), :]
    else:
        x_in = x

    # ---- choose the row-tile size (multiple of 8 dividing Hp, <= ~1 MiB) -----
    cands = sorted({t for t in (8, 16, 32, 64, 128, 256, 512, 1024) if Hp % t == 0} | {Hp})
    if max_tile_rows is not None:
        small = [t for t in cands if t <= max_tile_rows]
        cands = small if small else [min(cands)]
    fitting = [t for t in cands if t * W * 4 <= vmem_tile_budget]
    TM = max(fitting) if fitting else min(cands)
    n_tiles = Hp // TM
    tm_blk = TM // 8
    n_row_blk = Hp // 8

    needed_dr = [dr for dr in range(-P, P + 1) if np.any(kern[dr + R, :] != 0.0)]

    def shift_cols(a, dc):
        """b[:, c] = a[:, reflect(c + dc)], reflect about columns 0 / W-1."""
        if dc == 0:
            return a
        if dc > 0:
            pieces = [a[:, dc:]] + [a[:, W - 2 - k:W - 1 - k] for k in range(dc)]
        else:
            d = -dc
            pieces = [a[:, d - k:d - k + 1] for k in range(d)] + [a[:, :W - d]]
        return jnp.concatenate(pieces, axis=1)

    def kernel_fn(mid_ref, top_ref, bot_ref, o_ref):
        i = pl.program_id(0)
        is_first = i == 0
        is_last = i == pl.num_programs(0) - 1

        # cast once (hoisted out of the tap loop)
        mid = mid_ref[...].astype(jnp.float32)   # rows [r0, r0+TM)
        top = top_ref[...].astype(jnp.float32)   # rows [r0-8, r0)        (clamped)
        bot = bot_ref[...].astype(jnp.float32)   # rows [r0+TM, r0+TM+8)  (clamped)

        def shift_rows(dr):
            """b[r, :] = x[reflect(r0 + r + dr), :] (reflect about image rows)."""
            if dr == 0:
                return mid
            if dr > 0:
                tail = []
                for k in range(dr):                       # image row r0 + TM + k
                    inside = mid[TM - 2 - k:TM - 1 - k, :]   # bottom reflect
                    outside = bot[k:k + 1, :]                # halo strip
                    tail.append(jnp.where(is_last, inside, outside))
                return jnp.concatenate([mid[dr:, :]] + tail, axis=0)
            d = -dr
            head = []
            for k in range(d):                            # image row r0 - d + k
                inside = mid[d - k:d - k + 1, :]             # top reflect
                outside = top[8 - d + k:8 - d + k + 1, :]    # halo strip
                head.append(jnp.where(is_first, inside, outside))
            return jnp.concatenate(head + [mid[:TM - d, :]], axis=0)

        rows = {dr: shift_rows(dr) for dr in needed_dr}

        acc = None
        for dc in range(0, P + 1):
            col_w = kern[:, dc + R]
            a = None
            for dr in needed_dr:
                w = float(col_w[dr + R])
                if w == 0.0:            # prune zero taps
                    continue
                term = rows[dr] if w == 1.0 else w * rows[dr]
                a = term if a is None else a + term
            if a is None:
                continue
            if dc == 0:
                contrib = a
            else:                       # symmetric +/-dc share the same A
                contrib = shift_cols(a, dc) + shift_cols(a, -dc)
            acc = contrib if acc is None else acc + contrib

        o_ref[...] = acc.astype(o_ref.dtype)

    out = pl.pallas_call(
        kernel_fn,
        out_shape=jax.ShapeDtypeStruct((Hp, W), out_dtype),
        grid=(n_tiles,),
        in_specs=[
            pl.BlockSpec((TM, W), lambda i: (i, 0)),
            pl.BlockSpec((8, W), lambda i: (jnp.maximum(i * tm_blk - 1, 0), 0)),
            pl.BlockSpec((8, W), lambda i: (jnp.minimum((i + 1) * tm_blk, n_row_blk - 1), 0)),
        ],
        out_specs=pl.BlockSpec((TM, W), lambda i: (i, 0)),
        compiler_params=pltpu.CompilerParams(
            dimension_semantics=("parallel",),        # megacore sharding on v7x
            vmem_limit_bytes=32 * 1024 * 1024,        # safe on v5e/v6e/v7x
        ),
    )(x_in, x_in, x_in)

    return out[:H] if Hp != H else out


def ref_cone_filter(x: jax.Array, radius: int = RADIUS) -> jax.Array:
    """Independent pure-JAX reference (lax conv on the full 5x5 kernel)."""
    kern = _normalized_kernel(radius)
    xpad = jnp.pad(x, radius, mode="reflect")[None, None]
    w = jnp.asarray(kern)[None, None]
    y = jax.lax.conv_general_dilated(
        xpad, w, window_strides=(1, 1), padding="VALID",
        dimension_numbers=("NCHW", "OIHW", "NCHW"))
    return y[0, 0]


if __name__ == "__main__":
    key = jax.random.PRNGKey(0)
    k1, k2, k3 = jax.random.split(key, 3)

    tests = [
        # small image matching the module's typical 2-D input
        (jax.random.normal(k1, (16, 16), dtype=jnp.float32), {}),
        # multi-tile path: 3 row tiles of 16, lane-dense width 128 (halo logic)
        (jax.random.normal(k2, (48, 128), dtype=jnp.float32), {"max_tile_rows": 16}),
        # H not a multiple of 8 -> reflect row-extension path
        (jax.random.normal(k3, (30, 96), dtype=jnp.float32), {}),
    ]

    for x, kw in tests:
        y = jax.block_until_ready(cone_filter(x, **kw))
        y_ref = jax.block_until_ready(ref_cone_filter(x))
        assert y.shape == x.shape and y.dtype == x.dtype
        err = np.max(np.abs(np.asarray(y) - np.asarray(y_ref)))
        assert np.allclose(np.asarray(y), np.asarray(y_ref), rtol=1e-5, atol=1e-5), err

    print("KERNEL_OK")
</pallas_src>

<mosaic_0001>
module attributes {stable_mosaic.version = 11 : i64} {
  func.func @kernel_fn(%arg0: i32, %arg1: memref<16x16xf32, #tpu.memory_space<vmem>>, %arg2: memref<8x16xf32, #tpu.memory_space<vmem>>, %arg3: memref<8x16xf32, #tpu.memory_space<vmem>>, %arg4: memref<16x16xf32, #tpu.memory_space<vmem>>) attributes {dimension_semantics = [#tpu.dimension_semantics<parallel>], iteration_bounds = array<i64: 1>, scalar_prefetch = 0 : i64, scratch_operands = 0 : i64, tpu.core_type = #tpu.core_type<tc>, window_params = [{transform_indices = @transform_0, window_bounds = array<i64: 16, 16>}, {transform_indices = @transform_1, window_bounds = array<i64: 8, 16>}, {transform_indices = @transform_2, window_bounds = array<i64: 8, 16>}, {transform_indices = @transform_3, window_bounds = array<i64: 16, 16>}]} {
    %c0_i32 = arith.constant 0 : i32
    %0 = arith.cmpi eq, %arg0, %c0_i32 : i32
    %c0_i32_0 = arith.constant 0 : i32
    %1 = arith.cmpi eq, %arg0, %c0_i32_0 : i32
    %c0 = arith.constant 0 : index
    %c0_1 = arith.constant 0 : index
    %2 = vector.load %arg1[%c0, %c0_1] : memref<16x16xf32, #tpu.memory_space<vmem>>, vector<16x16xf32>
    %c0_2 = arith.constant 0 : index
    %c0_3 = arith.constant 0 : index
    %3 = vector.load %arg2[%c0_2, %c0_3] : memref<8x16xf32, #tpu.memory_space<vmem>>, vector<8x16xf32>
    %c0_4 = arith.constant 0 : index
    %c0_5 = arith.constant 0 : index
    %4 = vector.load %arg3[%c0_4, %c0_5] : memref<8x16xf32, #tpu.memory_space<vmem>>, vector<8x16xf32>
    %5 = vector.extract_strided_slice %2 {offsets = [1, 0], sizes = [1, 16], strides = [1, 1]} : vector<16x16xf32> to vector<1x16xf32>
    %6 = vector.extract_strided_slice %3 {offsets = [7, 0], sizes = [1, 16], strides = [1, 1]} : vector<8x16xf32> to vector<1x16xf32>
    %7 = arith.select %0, %5, %6 : vector<1x16xf32>
    %8 = vector.extract_strided_slice %2 {offsets = [0, 0], sizes = [15, 16], strides = [1, 1]} : vector<16x16xf32> to vector<15x16xf32>
    %9 = tpu.concatenate %7, %8 in 0 : vector<1x16xf32>, vector<15x16xf32> -> vector<16x16xf32>
    %10 = vector.extract_strided_slice %2 {offsets = [14, 0], sizes = [1, 16], strides = [1, 1]} : vector<16x16xf32> to vector<1x16xf32>
    %11 = vector.extract_strided_slice %4 {offsets = [0, 0], sizes = [1, 16], strides = [1, 1]} : vector<8x16xf32> to vector<1x16xf32>
    %12 = arith.select %1, %10, %11 : vector<1x16xf32>
    %13 = vector.extract_strided_slice %2 {offsets = [1, 0], sizes = [15, 16], strides = [1, 1]} : vector<16x16xf32> to vector<15x16xf32>
    %14 = tpu.concatenate %13, %12 in 0 : vector<15x16xf32>, vector<1x16xf32> -> vector<16x16xf32>
    %cst = arith.constant 0.119858876 : f32
    %15 = vector.broadcast %cst : f32 to vector<16x16xf32>
    %16 = arith.mulf %15, %9 : vector<16x16xf32>
    %cst_6 = arith.constant 0.239717752 : f32
    %17 = vector.broadcast %cst_6 : f32 to vector<16x16xf32>
    %18 = arith.mulf %17, %2 : vector<16x16xf32>
    %19 = arith.addf %16, %18 : vector<16x16xf32>
    %cst_7 = arith.constant 0.119858876 : f32
    %20 = vector.broadcast %cst_7 : f32 to vector<16x16xf32>
    %21 = arith.mulf %20, %14 : vector<16x16xf32>
    %22 = arith.addf %19, %21 : vector<16x16xf32>
    %cst_8 = arith.constant 0.0702117085 : f32
    %23 = vector.broadcast %cst_8 : f32 to vector<16x16xf32>
    %24 = arith.mulf %23, %9 : vector<16x16xf32>
    %cst_9 = arith.constant 0.119858876 : f32
    %25 = vector.broadcast %cst_9 : f32 to vector<16x16xf32>
    %26 = arith.mulf %25, %2 : vector<16x16xf32>
    %27 = arith.addf %24, %26 : vector<16x16xf32>
    %cst_10 = arith.constant 0.0702117085 : f32
    %28 = vector.broadcast %cst_10 : f32 to vector<16x16xf32>
    %29 = arith.mulf %28, %14 : vector<16x16xf32>
    %30 = arith.addf %27, %29 : vector<16x16xf32>
    %31 = vector.extract_strided_slice %30 {offsets = [0, 1], sizes = [16, 15], strides = [1, 1]} : vector<16x16xf32> to vector<16x15xf32>
    %32 = vector.extract_strided_slice %30 {offsets = [0, 14], sizes = [16, 1], strides = [1, 1]} : vector<16x16xf32> to vector<16x1xf32>
    %33 = tpu.concatenate %31, %32 in 1 : vector<16x15xf32>, vector<16x1xf32> -> vector<16x16xf32>
    %34 = vector.extract_strided_slice %30 {offsets = [0, 1], sizes = [16, 1], strides = [1, 1]} : vector<16x16xf32> to vector<16x1xf32>
    %35 = vector.extract_strided_slice %30 {offsets = [0, 0], sizes = [16, 15], strides = [1, 1]} : vector<16x16xf32> to vector<16x15xf32>
    %36 = tpu.concatenate %34, %35 in 1 : vector<16x1xf32>, vector<16x15xf32> -> vector<16x16xf32>
    %37 = arith.addf %33, %36 : vector<16x16xf32>
    %38 = arith.addf %22, %37 : vector<16x16xf32>
    %c0_11 = arith.constant 0 : index
    %c0_12 = arith.constant 0 : index
    %39 = vector.load %arg4[%c0_11, %c0_12] : memref<16x16xf32, #tpu.memory_space<vmem>>, vector<16x16xf32>
    tpu.vector_store %arg4[%c0_11, %c0_12], %38 {strides = array<i32>} : memref<16x16xf32, #tpu.memory_space<vmem>>, vector<16x16xf32>,
    return
  }
  func.func @transform_0(%arg0: i32) -> (i32, i32) {
    %c0_i32 = arith.constant 0 : i32
    %c0_i32_0 = arith.constant 0 : i32
    return %arg0, %c0_i32 : i32, i32
  }
  func.func @transform_1(%arg0: i32) -> (i32, i32) {
    %c2_i32 = arith.constant 2 : i32
    %0 = arith.muli %arg0, %c2_i32 : i32
    %c1_i32 = arith.constant 1 : i32
    %1 = arith.subi %0, %c1_i32 : i32
    %c0_i32 = arith.constant 0 : i32
    %2 = arith.maxsi %1, %c0_i32 : i32
    %c0_i32_0 = arith.constant 0 : i32
    %c0_i32_1 = arith.constant 0 : i32
    return %2, %c0_i32_0 : i32, i32
  }
  func.func @transform_2(%arg0: i32) -> (i32, i32) {
    %c1_i32 = arith.constant 1 : i32
    %0 = arith.addi %arg0, %c1_i32 : i32
    %c2_i32 = arith.constant 2 : i32
    %1 = arith.muli %0, %c2_i32 : i32
    %c1_i32_0 = arith.constant 1 : i32
    %2 = arith.minsi %1, %c1_i32_0 : i32
    %c0_i32 = arith.constant 0 : i32
    %c0_i32_1 = arith.constant 0 : i32
    return %2, %c0_i32 : i32, i32
  }
  func.func @transform_3(%arg0: i32) -> (i32, i32) {
    %c0_i32 = arith.constant 0 : i32
    %c0_i32_0 = arith.constant 0 : i32
    return %arg0, %c0_i32 : i32, i32
  }
}

</mosaic_0001>

<bundles_post_ra>
// kernel: tpu_custom_call.1
= control target key start
LH: loop header
LB: loop body
LE: loop exit
PB: predicated region body
PF: predicated region fallthrough
CT: control target
= control target key end

     0   :  { %8 = vsyncpa [#allocation3], 0  ;;  %s324_s0 = inlined_call_operand.hbm [shape: f32[16,16], index: 0, kind: input, shape index: {}]   ;;  %s325_s1 = inlined_call_operand.hbm [shape: f32[16,16], index: 1, kind: input, shape index: {}]   ;;  %s326_s2 = inlined_call_operand.hbm [shape: f32[16,16], index: 2, kind: input, shape index: {}]   ;;  %s327_s3 = inlined_call_operand.hbm [shape: f32[16,16], index: 3, kind: output, shape index: {}]  }
   0x1   :  { %9 = vsyncpa [#allocation6], 0 }
   0x2   :  { %10 = vsyncpa [#allocation4], 0  ;;  %s276_s12 = smov [#allocation5]   ;;  %s277_s14 = smov [#allocation2]  }
   0x3   :  { %s35_s13 = sshll.u32 %s276_s12, 4  ;;  %s16_s15 = sshll.u32 %s277_s14, 4  ;;  %s36_s13 = int_to_ptr.vmem [resolvable:$true] %s35_s13  ;;  %s17_s15 = int_to_ptr.vmem [resolvable:$true] %s16_s15 }
   0x4   :  { %s195_s16 = scalar_lea.vmem %s36_s13, 128  ;;  %p200_p1 = scmp.lt.s32.totalorder %s36_s13, %s36_s13 }
   0x5   :  { %p196_p0 = scmp.ne.s32.totalorder %s36_s13, %s195_s16  ;;  %p201_p2 = scmp.lt.s32.totalorder %s195_s16, %s195_s16 }
   0x7   :  { %p202_p3 = por %p201_p2, %p200_p1 }
   0x9   :  { %p203_p4 = pnand %p202_p3, %p196_p0 }
   0xb   :  { %206 = shalt.err (!%p203_p4)
}
   0xc   :  { %38 = dma.hbm_to_vmem [thread:$0]  %s325_s1, 128, %s36_s13, [#allocation6]  }
   0xd   :  { %s215_s19 = scalar_lea.vmem %s17_s15, 256  ;;  %p220_p6 = scmp.lt.s32.totalorder %s17_s15, %s17_s15 }
   0xe   :  { %p216_p5 = scmp.ne.s32.totalorder %s17_s15, %s215_s19  ;;  %p221_p7 = scmp.lt.s32.totalorder %s215_s19, %s215_s19 }
  0x10   :  { %p222_p8 = por %p221_p7, %p220_p6 }
  0x12   :  { %p223_p9 = pnand %p222_p8, %p216_p5 }
  0x14   :  { %226 = shalt.err (!%p223_p9)
}
  0x15   :  { %s278_s20 = smov 128   ;;  %s279_s21 = smov 8  }
  0x16   :  { %22 = dma.hbm_to_vmem [thread:$0]  %s324_s0, 256, %s17_s15, [#allocation3], %s278_s20, %s278_s20, %s279_s21  }
  0x17   :  { %s49_s1 = scalar_lea.hbm %s326_s2, 128  ;;  %s280_s26 = smov [#allocation7]  }
  0x18   :  { %s51_s27 = sshll.u32 %s280_s26, 4  ;;  %s52_s27 = int_to_ptr.vmem [resolvable:$true] %s51_s27 }
  0x19   :  { %s237_s28 = scalar_lea.vmem %s52_s27, 128  ;;  %p242_p11 = scmp.lt.s32.totalorder %s52_s27, %s52_s27 }
  0x1a   :  { %p238_p10 = scmp.ne.s32.totalorder %s52_s27, %s237_s28  ;;  %p243_p12 = scmp.lt.s32.totalorder %s237_s28, %s237_s28 }
  0x1c   :  { %p244_p13 = por %p243_p12, %p242_p11 }
  0x1e   :  { %p245_p0 = pnand %p244_p13, %p238_p10 }
  0x20   :  { %248 = shalt.err (!%p245_p0)
}
  0x21   :  { %54 = dma.hbm_to_vmem [thread:$0]  %s49_s1, 128, %s52_s27, [#allocation6]  }
  0x22   :  { %270 = dma.done.wait [#allocation3], 256  }
  0x23   :  { %271 = vsyncadd [#allocation3], 4294967040 }
  0x24   :  { %272 = dma.done.wait [#allocation6], 256  }
  0x25   :  { %273 = vsyncadd [#allocation6], 4294967040  ;;  %v73_v0 = vld [vmem:[#allocation2] sm:$0xff]  ;;  %v74_v1 = vld [vmem:[#allocation2 + $0x8] sm:$0xff]  ;;  %vm89_vm0 = vcmask 1040384   ;;  %vm100_vm1 = vcmask 1046528  }
  0x26   :  { %v85_v2 = vrot.slane %v73_v0, 1  ;;  %v90_v3 = vrot.slane %v73_v0, 7  ;;  %v102_v4 = vrot.slane %v74_v1, 1  ;;  %v122_v5 = vmul.f32 0.119858876, %v73_v0  ;;  %s281_s0 = smov 1  }
  0x27   :  { %v91_v6 = vrot.slane %v74_v1, 7  ;;  %v123_v7 = vmul.f32 0.119858876, %v74_v1  ;;  %v112_v10 = vmul.f32 0.23971775, %v73_v0  ;;  %s282_s2 = smov 127  }
  0x28   :  { %v95_v8 = vsel %vm89_vm0, %v85_v2, %v90_v3  ;;  %v103_v9 = vsel %vm100_vm1, %v85_v2, %v102_v4  ;;  %v113_v11 = vmul.f32 0.23971775, %v74_v1  ;;  %vm144_vm2 = vcmask 121856   ;;  %s283_s29 = smov [#allocation8]  }
  0x29   :  { %v116_v12 = vmul.f32 0.119858876, %v103_v9  ;;  %v120_v13 = vmul.f32 0.07021171, %v95_v8  ;;  %v126_v14 = vmul.f32 0.07021171, %v103_v9  ;;  %v92_v15 = vsel %vm89_vm0, %v90_v3, %v91_v6 }
  0x2a   :  { %v110_v16 = vmul.f32 0.119858876, %v95_v8  ;;  %v109_v17 = vsel %vm100_vm1, %v102_v4, %v91_v6  ;;  %v111_v18 = vmul.f32 0.119858876, %v92_v15  ;;  %v121_v19 = vmul.f32 0.07021171, %v92_v15 }
  0x2b   :  { %v124_v20 = vadd.f32 %v122_v5, %v120_v13  ;;  %v117_v21 = vmul.f32 0.119858876, %v109_v17  ;;  %v127_v22 = vmul.f32 0.07021171, %v109_v17  ;;  %vm147_vm3 = vcmask 7168   ;;  %s162_s30 = sshll.u32 %s283_s29, 4  ;;  %s163_s30 = int_to_ptr.vmem [resolvable:$true] %s162_s30 }
  0x2c   :  { %v125_v23 = vadd.f32 %v123_v7, %v121_v19  ;;  %v114_v24 = vadd.f32 %v112_v10, %v110_v16  ;;  %v115_v25 = vadd.f32 %v113_v11, %v111_v18  ;;  %vm154_vm4 = vcmask 130048   ;;  %s250_s4 = scalar_lea.vmem %s163_s30, 256  ;;  %p255_p2 = scmp.lt.s32.totalorder %s163_s30, %s163_s30 }
  0x2d   :  { %v128_v26 = vadd.f32 %v126_v14, %v124_v20  ;;  %p251_p1 = scmp.ne.s32.totalorder %s163_s30, %s250_s4  ;;  %p256_p3 = scmp.lt.s32.totalorder %s250_s4, %s250_s4 }
  0x2e   :  { %v118_v27 = vadd.f32 %v116_v12, %v114_v24  ;;  %v119_v28 = vadd.f32 %v117_v21, %v115_v25  ;;  %v129_v29 = vadd.f32 %v127_v22, %v125_v23 }
  0x2f   :  { %138 = vrot.lane.b32.xlu1 %v128_v26, %s281_s0  ;;  %132 = vrot.lane.b32.xlu0 %v128_v26, %s282_s2  ;;  %p257_p4 = por %p256_p3, %p255_p2 }
  0x31   :  { %p258_p5 = pnand %p257_p4, %p251_p1 }
  0x33   :  { %140 = vrot.lane.b32.xlu1 %v129_v29, %s281_s0  ;;  %134 = vrot.lane.b32.xlu0 %v129_v29, %s282_s2 }
  0xa1   :  { %v139_v30 = vpop.permute.xlu1 %138  ;;  %v133_v31 = vpop.permute.xlu0 %132 }
  0xa2   :  { %v145_v32 = vsel %vm144_vm2, %v133_v31, %v139_v30  ;;  %v148_v33 = vsel %vm147_vm3, %v133_v31, %v139_v30 }
  0xa3   :  { %v150_v34 = vadd.f32 %v148_v33, %v145_v32 }
  0xa5   :  { %v152_v35 = vadd.f32 %v150_v34, %v118_v27  ;;  %v141_v36 = vpop.permute.xlu1 %140  ;;  %v135_v37 = vpop.permute.xlu0 %134 }
  0xa6   :  { %v146_v38 = vsel %vm144_vm2, %v135_v37, %v141_v36  ;;  %v149_v39 = vsel %vm147_vm3, %v135_v37, %v141_v36 }
  0xa7   :  { %v151_v40 = vadd.f32 %v149_v39, %v146_v38  ;;  %155 = vst.msk [vmem:[#allocation8] sm:$0xff] %vm154_vm4, %v152_v35 }
  0xa9   :  { %v153_v41 = vadd.f32 %v151_v40, %v119_v28 }
  0xab   :  { %156 = vst.msk [vmem:[#allocation8 + $0x8] sm:$0xff] %vm154_vm4, %v153_v41 }
  0xac   :  { %261 = shalt.err (!%p258_p5)
}
  0xad   :  { %168 = dma.vmem_to_hbm [thread:$0]  %s163_s30, 256, %s327_s3, [#allocation4], %s278_s20, %s278_s20, %s279_s21  }
  0xae   :  { %274 = dma.done.wait [#allocation4], 256  }
  0xaf   :  { %275 = vsyncadd [#allocation4], 4294967040 }
  0xb0   :  { %172 = vsyncpa [#allocation3], 1 }
  0xb1   :  { %173 = vsyncpa [#allocation6], 1 }
  0xb2   :  { %174 = vsyncpa [#allocation4], 1 }

</bundles_post_ra>
